<compile_context>
chip_gen: v6e
topology: v6e:2x2x1
jax: 0.10.0
libtpu: 0.0.40
codegen_flags: <defaults>
</compile_context>

<pallas_src>
import numpy as np

import jax
import jax.numpy as jnp
from jax.experimental import pallas as pl
from jax.experimental.pallas import tpu as pltpu


# ----------------------------- Pallas kernels ------------------------------

def _embed_upsample_kernel(patches_ref, w_pe_ref, b_pe_ref, w_up_ref, feat_ref):
    # tokens = patches @ W_pe + b          (SS, C)
    # feat   = W_up @ tokens               (HW, C), W_up = kron(L, L)
    tokens = jnp.dot(patches_ref[0], w_pe_ref[...],
                     preferred_element_type=jnp.float32) + b_pe_ref[...]
    feat_ref[0] = jnp.dot(w_up_ref[...], tokens,
                          preferred_element_type=jnp.float32)


def _make_roi_boxes_kernel(H, W):
    HW = H * W

    def kernel(mask_ref, box_ref):
        m = mask_ref[0]                                         # (M, HW)
        M = m.shape[0]
        pos = jax.lax.broadcasted_iota(jnp.int32, (M, HW), 1)   # flat index
        ycoord = pos // W
        xcoord = pos % W
        inside = m > 0
        big = jnp.int32(HW)
        neg = jnp.int32(-1)
        y_min = jnp.min(jnp.where(inside, ycoord, big), axis=1, keepdims=True)
        x_min = jnp.min(jnp.where(inside, xcoord, big), axis=1, keepdims=True)
        y_max = jnp.max(jnp.where(inside, ycoord, neg), axis=1, keepdims=True)
        x_max = jnp.max(jnp.where(inside, xcoord, neg), axis=1, keepdims=True)
        x_min = jnp.maximum(x_min, 0)
        y_min = jnp.maximum(y_min, 0)
        x_max = jnp.minimum(x_max + 1, W - 1)   # torch: clamp(x_max+1, max=W-1)
        y_max = jnp.minimum(y_max + 1, H - 1)
        # pack [x_min, y_min, x_max, y_max] along the last dim without concat
        col = jax.lax.broadcasted_iota(jnp.int32, (M, 4), 1)
        box = jnp.where(col == 0, x_min,
                        jnp.where(col == 1, y_min,
                                  jnp.where(col == 2, x_max, y_max)))
        box = box.astype(jnp.float32)
        empty = jnp.sum(m, axis=1, keepdims=True) == 0.0
        box_ref[0] = jnp.where(empty, 0.0, box)

    return kernel


def _make_roi_pool_kernel(M, R):
    RR = R * R

    def kernel(feat_ref, fidx_ref, fw_ref, midx_ref, mw_ref, mask_ref,
               roi_mask_ref, emb_ref):
        feat = feat_ref[0]                 # (HW, C) lane-dense features
        HW, C = feat.shape
        mask_img = mask_ref[0]             # (M, HW) lane-major binary masks

        def dense_rows(idx, w):
            # Rebuild the sparse roi_align weight rows (few non-zeros per sample
            # point) inside VMEM from compact corner tables.  Nothing HW-sized
            # is ever built in HBM or DMA'd.
            K = idx.shape[1]
            lane = jax.lax.broadcasted_iota(jnp.int32, (M * RR, K, HW), 2)
            hit = lane == idx[:, :, None]
            return jnp.sum(jnp.where(hit, w[:, :, None], 0.0), axis=1)  # (M*RR, HW)

        wf = dense_rows(fidx_ref[0], fw_ref[0])     # feature sampling weights
        wm = dense_rows(midx_ref[0], mw_ref[0])     # mask-crop sampling weights

        # All M ROIs of this image in a single MXU call.
        roi_feat = jnp.dot(wf, feat, preferred_element_type=jnp.float32)  # (M*RR, C)

        # Mask crop on the VPU/XLU (lane-major mask, no N=1 MXU matmul).
        crop = jnp.sum(wm.reshape(M, RR, HW) * mask_img[:, None, :], axis=2)  # (M, RR)
        roi_mask = (crop > 0.0).astype(jnp.float32)        # torch: cropped_masks > 0

        masked = roi_feat.reshape(M, RR, C) * roi_mask[:, :, None]            # (M, RR, C)
        feat_sum = jnp.sum(masked, axis=1)                                    # (M, C)
        mask_sum = jnp.maximum(jnp.sum(roi_mask, axis=1, keepdims=True), 1e-6)
        emb_ref[0] = feat_sum / mask_sum                    # lane-dense (M, C)
        roi_mask_ref[0] = roi_mask                          # (M, RR)

    return kernel


# --------------------------- Pallas call wrappers ---------------------------

def embed_and_upsample(patches, w_pe, b_pe, w_up):
    B, SS, K = patches.shape
    C = w_pe.shape[1]
    HW = w_up.shape[0]
    cost = pl.CostEstimate(
        flops=int(2 * B * (SS * K * C + HW * SS * C)),
        transcendentals=0,
        bytes_accessed=int(4 * (B * SS * K + K * C + C + HW * SS + B * HW * C)))
    return pl.pallas_call(
        _embed_upsample_kernel,
        grid=(B,),
        in_specs=[pl.BlockSpec((1, SS, K), lambda b: (b, 0, 0)),
                  pl.BlockSpec((K, C), lambda b: (0, 0)),      # VMEM-resident
                  pl.BlockSpec((1, C), lambda b: (0, 0)),
                  pl.BlockSpec((HW, SS), lambda b: (0, 0))],
        out_specs=pl.BlockSpec((1, HW, C), lambda b: (b, 0, 0)),
        out_shape=jax.ShapeDtypeStruct((B, HW, C), jnp.float32),
        compiler_params=pltpu.CompilerParams(
            dimension_semantics=("parallel",)),
        cost_estimate=cost,
    )(patches, w_pe, b_pe.reshape(1, C), w_up)


def roi_boxes_from_masks(masks_flat, H, W):
    N, M, HW = masks_flat.shape
    return pl.pallas_call(
        _make_roi_boxes_kernel(H, W),
        grid=(N,),
        in_specs=[pl.BlockSpec((1, M, HW), lambda n: (n, 0, 0))],
        out_specs=pl.BlockSpec((1, M, 4), lambda n: (n, 0, 0)),
        out_shape=jax.ShapeDtypeStruct((N, M, 4), jnp.float32),
        compiler_params=pltpu.CompilerParams(
            dimension_semantics=("parallel",)),
    )(masks_flat)


def mask_roi_pool(feat_flat, fidx, fw, midx, mw, masks_flat, R):
    N, HW, C = feat_flat.shape
    M = masks_flat.shape[1]
    MRR = M * R * R
    S4 = midx.shape[-1]
    cost = pl.CostEstimate(
        flops=int(2 * N * MRR * HW * C            # stacked ROI matmul
                  + 3 * N * MRR * (4 + S4) * HW   # in-VMEM weight rebuild
                  + 3 * N * MRR * HW),            # crop reduce
        transcendentals=0,
        bytes_accessed=int(4 * (N * HW * C + N * M * HW
                                + 2 * N * MRR * (4 + S4)
                                + N * M * (R * R + C))))
    roi_mask, emb = pl.pallas_call(
        _make_roi_pool_kernel(M, R),
        grid=(N,),
        in_specs=[pl.BlockSpec((1, HW, C), lambda n: (n, 0, 0)),
                  pl.BlockSpec((1, MRR, 4), lambda n: (n, 0, 0)),
                  pl.BlockSpec((1, MRR, 4), lambda n: (n, 0, 0)),
                  pl.BlockSpec((1, MRR, S4), lambda n: (n, 0, 0)),
                  pl.BlockSpec((1, MRR, S4), lambda n: (n, 0, 0)),
                  pl.BlockSpec((1, M, HW), lambda n: (n, 0, 0))],
        out_specs=(pl.BlockSpec((1, M, R * R), lambda n: (n, 0, 0)),
                   pl.BlockSpec((1, M, C), lambda n: (n, 0, 0))),
        out_shape=(jax.ShapeDtypeStruct((N, M, R * R), jnp.float32),
                   jax.ShapeDtypeStruct((N, M, C), jnp.float32)),
        compiler_params=pltpu.CompilerParams(
            dimension_semantics=("parallel",),
            vmem_limit_bytes=64 * 1024 * 1024),
        cost_estimate=cost,
    )(feat_flat, fidx, fw, midx, mw, masks_flat)
    return roi_mask, emb


# ------------- compact roi_align corner tables (plain-JAX glue) -------------
# Only O(N*M*RR*4) / O(N*M*RR*G*G*4) scalars -- no HW-sized expansion here.

def _bilinear_corner_weights(y, x, H, W):
    """Exact torchvision `bilinear_interpolate`: 4 corner flat indices + weights."""
    valid = (y >= -1.0) & (y <= float(H)) & (x >= -1.0) & (x <= float(W))
    yc = jnp.maximum(y, 0.0)
    xc = jnp.maximum(x, 0.0)
    y_low0 = jnp.floor(yc).astype(jnp.int32)
    x_low0 = jnp.floor(xc).astype(jnp.int32)
    cy = y_low0 >= H - 1
    cx = x_low0 >= W - 1
    y_low = jnp.where(cy, H - 1, y_low0)
    y_high = jnp.where(cy, H - 1, y_low0 + 1)
    yv = jnp.where(cy, jnp.float32(H - 1), yc)
    x_low = jnp.where(cx, W - 1, x_low0)
    x_high = jnp.where(cx, W - 1, x_low0 + 1)
    xv = jnp.where(cx, jnp.float32(W - 1), xc)
    ly = yv - y_low.astype(jnp.float32)
    lx = xv - x_low.astype(jnp.float32)
    hy = 1.0 - ly
    hx = 1.0 - lx
    w = jnp.stack([hy * hx, hy * lx, ly * hx, ly * lx], axis=-1)
    w = jnp.where(valid[..., None], w, 0.0)
    idx = jnp.stack([y_low * W + x_low, y_low * W + x_high,
                     y_high * W + x_low, y_high * W + x_high], axis=-1)
    return idx, w


def feature_roi_corners(boxes, H, W, R):
    # torchvision roi_align(spatial_scale=1, sampling_ratio=1, aligned=False)
    N, M = boxes.shape[:2]
    x1, y1, x2, y2 = (boxes[..., i] for i in range(4))
    roi_w = jnp.maximum(x2 - x1, 1.0)
    roi_h = jnp.maximum(y2 - y1, 1.0)
    bin_h = roi_h / R
    bin_w = roi_w / R
    p = jnp.arange(R, dtype=jnp.float32)
    y = y1[..., None] + (p + 0.5) * bin_h[..., None]     # (N, M, R) over ph
    x = x1[..., None] + (p + 0.5) * bin_w[..., None]     # (N, M, R) over pw
    ys = jnp.broadcast_to(y[..., :, None], (N, M, R, R))
    xs = jnp.broadcast_to(x[..., None, :], (N, M, R, R))
    idx, w = _bilinear_corner_weights(ys, xs, H, W)      # (N, M, R, R, 4)
    return idx.reshape(N, M * R * R, 4), w.reshape(N, M * R * R, 4)


def mask_crop_corners(boxes, H, W, R):
    # torchvision roi_align(spatial_scale=1, sampling_ratio=0, aligned=True);
    # boxes are already integral (the long-cast in the reference is identity).
    N, M = boxes.shape[:2]
    x1, y1, x2, y2 = (boxes[..., i] for i in range(4))
    start_x = x1 - 0.5
    start_y = y1 - 0.5
    roi_w = x2 - x1
    roi_h = y2 - y1
    bin_h = roi_h / R
    bin_w = roi_w / R
    grid_h = jnp.ceil(bin_h).astype(jnp.int32)
    grid_w = jnp.ceil(bin_w).astype(jnp.int32)
    count = jnp.maximum(grid_h * grid_w, 1).astype(jnp.float32)   # (N, M)
    G = -(-H // R)   # static upper bound of the adaptive sampling grid
    gh = jnp.maximum(grid_h, 1).astype(jnp.float32)
    gw = jnp.maximum(grid_w, 1).astype(jnp.float32)
    p = jnp.arange(R, dtype=jnp.float32)
    s = jnp.arange(G, dtype=jnp.float32)
    y = (start_y[..., None, None] + p[:, None] * bin_h[..., None, None]
         + (s[None, :] + 0.5) * bin_h[..., None, None] / gh[..., None, None])
    x = (start_x[..., None, None] + p[:, None] * bin_w[..., None, None]
         + (s[None, :] + 0.5) * bin_w[..., None, None] / gw[..., None, None])
    Y = jnp.broadcast_to(y[:, :, :, None, :, None], (N, M, R, R, G, G))
    X = jnp.broadcast_to(x[:, :, None, :, None, :], (N, M, R, R, G, G))
    valid_y = jnp.arange(G) < grid_h[..., None]          # (N, M, G)
    valid_x = jnp.arange(G) < grid_w[..., None]
    sample_ok = (valid_y[:, :, None, None, :, None]
                 & valid_x[:, :, None, None, None, :])   # (N, M, 1, 1, G, G)
    idx, w = _bilinear_corner_weights(Y, X, H, W)        # (N, M, R, R, G, G, 4)
    w = jnp.where(sample_ok[..., None], w, 0.0)
    w = w / count[:, :, None, None, None, None, None]
    S4 = G * G * 4
    return idx.reshape(N, M * R * R, S4), w.reshape(N, M * R * R, S4)


# ------------------------------ torch-like glue ------------------------------

def _bilinear_interp_matrix(in_size, out_size):
    # PyTorch upsample_bilinear2d, align_corners=False
    scale = in_size / out_size
    dst = np.arange(out_size, dtype=np.float64)
    src = np.maximum((dst + 0.5) * scale - 0.5, 0.0)
    i0 = np.minimum(np.floor(src).astype(np.int64), in_size - 1)
    i1 = np.minimum(i0 + 1, in_size - 1)
    l1 = src - i0
    l0 = 1.0 - l1
    L = np.zeros((out_size, in_size), dtype=np.float64)
    np.add.at(L, (np.arange(out_size), i0), l0)
    np.add.at(L, (np.arange(out_size), i1), l1)
    return L


def _upsample_kron_matrix(in_size, out_size):
    # W_up[y*out+x, u*in+v] = L[y, u] * L[x, v]  (separable bilinear as one matmul)
    L = _bilinear_interp_matrix(in_size, out_size)
    return jnp.asarray(np.kron(L, L), dtype=jnp.float32)   # (out*out, in*in)


def adjust_tensor_size(t, target_c, target_h, target_w):
    c, h, w = t.shape
    if c < target_c:
        pad = target_c - c
        pf = pad // 2
        pb = pad - pf
        t = jnp.concatenate([jnp.zeros((pf, h, w), t.dtype), t,
                             jnp.zeros((pb, h, w), t.dtype)], axis=0)
    elif c > target_c:
        t = t[:target_c]
    if h > target_h or w > target_w:
        # F.interpolate(mode='nearest'): src = floor(dst * in/out)
        t = t.astype(jnp.float32)
        ih = jnp.minimum((jnp.arange(target_h) * (h / target_h)).astype(jnp.int32), h - 1)
        iw = jnp.minimum((jnp.arange(target_w) * (w / target_w)).astype(jnp.int32), w - 1)
        t = t[:, ih, :][:, :, iw]
    elif h < target_h or w < target_w:
        ph = target_h - h
        pw = target_w - w
        pt, pb = ph // 2, ph - ph // 2
        plft, pr = pw // 2, pw - pw // 2
        t = jnp.pad(t, ((0, 0), (pt, pb), (plft, pr)))
    return t


def _patchify(images, p):
    B, C, H, W = images.shape
    S = H // p
    x = images.reshape(B, C, S, p, S, p)
    x = x.transpose(0, 2, 4, 1, 3, 5)            # (B, S, S, C, p, p)
    return x.reshape(B, S * S, C * p * p)


def visual_token_embedding_forward(images, batch_masks_list, params, cfg):
    B, _, Himg, _ = images.shape
    out_res = int(Himg)
    p = cfg["patch_size"]
    C = cfg["mm_hidden_size"]
    R = cfg["token_roi_resolution"]
    S = Himg // p
    HW = out_res * out_res

    # Fused synthetic vision encoder + bilinear upsample -> (B, HW, C) lane-dense.
    patches = _patchify(images, p)                     # (B, S*S, Cin*p*p)
    w_up = _upsample_kron_matrix(S, out_res)           # (HW, S*S)
    feat_flat = embed_and_upsample(patches, params["w_pe"], params["b_pe"], w_up)

    # Pad the ragged per-image mask lists like the torch module.
    target_m = max(int(m.shape[0]) for m in batch_masks_list)
    padded = [adjust_tensor_size(m, target_m, out_res, out_res)
              for m in batch_masks_list]
    batch_masks = jnp.stack(padded).astype(jnp.float32)          # (B, M, H, W)
    masks_flat = batch_masks.reshape(B, target_m, HW)            # lane-major

    roi_boxes = roi_boxes_from_masks(masks_flat, out_res, out_res)   # (B, M, 4)

    # Compact corner tables (no dense HW-sized weights in HBM).
    fidx, fw = feature_roi_corners(roi_boxes, out_res, out_res, R)
    midx, mw = mask_crop_corners(roi_boxes, out_res, out_res, R)

    roi_masks_flat, embeddings = mask_roi_pool(
        feat_flat, fidx, fw, midx, mw, masks_flat, R)
    roi_masks = roi_masks_flat.reshape(B, target_m, R, R)
    return roi_boxes / out_res, roi_masks, embeddings


# ----------------------------------- main -----------------------------------

if __name__ == "__main__":
    cfg = dict(mm_hidden_size=128, token_roi_resolution=4, patch_size=4)

    key = jax.random.PRNGKey(0)
    k_img, k_w, k_b = jax.random.split(key, 3)
    images = jax.random.normal(k_img, (2, 3, 16, 16), dtype=jnp.float32)
    params = {
        "w_pe": 0.1 * jax.random.normal(
            k_w, (3 * cfg["patch_size"] * cfg["patch_size"], cfg["mm_hidden_size"]),
            dtype=jnp.float32),
        "b_pe": 0.1 * jax.random.normal(
            k_b, (cfg["mm_hidden_size"],), dtype=jnp.float32),
    }

    # per-image binary masks (ragged list, like the torch module)
    m0 = jnp.zeros((2, 16, 16), jnp.float32)
    m0 = m0.at[0, 2:10, 3:12].set(1.0)
    m0 = m0.at[1, 8:16, 0:6].set(1.0)
    m1 = jnp.zeros((3, 16, 16), jnp.float32)
    m1 = m1.at[0, 0:5, 0:5].set(1.0)
    m1 = m1.at[1, 5:14, 6:16].set(1.0)
    # m1[2] intentionally left all-zero -> exercises the empty-mask path
    batch_masks = [m0, m1]

    roi_boxes, roi_masks, embeddings = visual_token_embedding_forward(
        images, batch_masks, params, cfg)
    jax.block_until_ready((roi_boxes, roi_masks, embeddings))

    assert roi_boxes.shape == (2, 3, 4)
    assert roi_masks.shape == (2, 3, 4, 4)
    assert embeddings.shape == (2, 3, 128)
    assert bool(jnp.all(jnp.isfinite(embeddings)))
    print("KERNEL_OK")
</pallas_src>

<mosaic_0001>
module attributes {stable_mosaic.version = 11 : i64} {
  func.func @_embed_upsample_kernel(%arg0: i32, %arg1: memref<1x16x48xf32, #tpu.memory_space<vmem>>, %arg2: memref<48x128xf32, #tpu.memory_space<vmem>>, %arg3: memref<1x128xf32, #tpu.memory_space<vmem>>, %arg4: memref<256x16xf32, #tpu.memory_space<vmem>>, %arg5: memref<1x256x128xf32, #tpu.memory_space<vmem>>) attributes {dimension_semantics = [#tpu.dimension_semantics<parallel>], iteration_bounds = array<i64: 2>, scalar_prefetch = 0 : i64, scratch_operands = 0 : i64, tpu.core_type = #tpu.core_type<tc>, window_params = [{transform_indices = @transform_0, window_bounds = array<i64: 1, 16, 48>}, {pipeline_mode = #tpu.pipeline_mode<synchronous>, transform_indices = @transform_1, window_bounds = array<i64: 48, 128>}, {pipeline_mode = #tpu.pipeline_mode<synchronous>, transform_indices = @transform_2, window_bounds = array<i64: 1, 128>}, {pipeline_mode = #tpu.pipeline_mode<synchronous>, transform_indices = @transform_3, window_bounds = array<i64: 256, 16>}, {transform_indices = @transform_4, window_bounds = array<i64: 1, 256, 128>}]} {
    %c0 = arith.constant 0 : index
    %c0_0 = arith.constant 0 : index
    %c0_1 = arith.constant 0 : index
    %0 = vector.load %arg1[%c0, %c0_0, %c0_1] : memref<1x16x48xf32, #tpu.memory_space<vmem>>, vector<1x16x48xf32>
    %1 = vector.shape_cast %0 : vector<1x16x48xf32> to vector<16x48xf32>
    %c0_2 = arith.constant 0 : index
    %c0_3 = arith.constant 0 : index
    %2 = vector.load %arg2[%c0_2, %c0_3] : memref<48x128xf32, #tpu.memory_space<vmem>>, vector<48x128xf32>
    %cst = arith.constant dense<0.000000e+00> : vector<16x128xf32>
    %3 = tpu.matmul %1, %2, %cst {dimension_numbers = #tpu.dot_dimension_numbers<[1], [0], [0], [1], [0, 0, 1, 1], [], []>} : vector<16x48xf32>, vector<48x128xf32>, vector<16x128xf32> -> vector<16x128xf32>
    %c0_4 = arith.constant 0 : index
    %c0_5 = arith.constant 0 : index
    %4 = vector.load %arg3[%c0_4, %c0_5] : memref<1x128xf32, #tpu.memory_space<vmem>>, vector<1x128xf32>
    %5 = vector.broadcast %4 : vector<1x128xf32> to vector<16x128xf32>
    %6 = arith.addf %3, %5 : vector<16x128xf32>
    %c0_6 = arith.constant 0 : index
    %c0_7 = arith.constant 0 : index
    %7 = vector.load %arg4[%c0_6, %c0_7] : memref<256x16xf32, #tpu.memory_space<vmem>>, vector<256x16xf32>
    %cst_8 = arith.constant dense<0.000000e+00> : vector<256x128xf32>
    %8 = tpu.matmul %7, %6, %cst_8 {dimension_numbers = #tpu.dot_dimension_numbers<[1], [0], [0], [1], [0, 0, 1, 1], [], []>} : vector<256x16xf32>, vector<16x128xf32>, vector<256x128xf32> -> vector<256x128xf32>
    %c0_9 = arith.constant 0 : index
    %c0_10 = arith.constant 0 : index
    %c0_11 = arith.constant 0 : index
    %9 = vector.load %arg5[%c0_9, %c0_10, %c0_11] : memref<1x256x128xf32, #tpu.memory_space<vmem>>, vector<1x256x128xf32>
    %10 = vector.shape_cast %9 : vector<1x256x128xf32> to vector<256x128xf32>
    %11 = vector.shape_cast %8 : vector<256x128xf32> to vector<1x256x128xf32>
    tpu.vector_store %arg5[%c0_9, %c0_10, %c0_11], %11 {strides = array<i32>} : memref<1x256x128xf32, #tpu.memory_space<vmem>>, vector<1x256x128xf32>,
    return
  }
  func.func @transform_0(%arg0: i32) -> (i32, i32, i32) {
    %c0_i32 = arith.constant 0 : i32
    %c0_i32_0 = arith.constant 0 : i32
    %c0_i32_1 = arith.constant 0 : i32
    return %arg0, %c0_i32, %c0_i32_0 : i32, i32, i32
  }
  func.func @transform_1(%arg0: i32) -> (i32, i32) {
    %c0_i32 = arith.constant 0 : i32
    %c0_i32_0 = arith.constant 0 : i32
    %c0_i32_1 = arith.constant 0 : i32
    return %c0_i32, %c0_i32_0 : i32, i32
  }
  func.func @transform_2(%arg0: i32) -> (i32, i32) {
    %c0_i32 = arith.constant 0 : i32
    %c0_i32_0 = arith.constant 0 : i32
    %c0_i32_1 = arith.constant 0 : i32
    return %c0_i32, %c0_i32_0 : i32, i32
  }
  func.func @transform_3(%arg0: i32) -> (i32, i32) {
    %c0_i32 = arith.constant 0 : i32
    %c0_i32_0 = arith.constant 0 : i32
    %c0_i32_1 = arith.constant 0 : i32
    return %c0_i32, %c0_i32_0 : i32, i32
  }
  func.func @transform_4(%arg0: i32) -> (i32, i32, i32) {
    %c0_i32 = arith.constant 0 : i32
    %c0_i32_0 = arith.constant 0 : i32
    %c0_i32_1 = arith.constant 0 : i32
    return %arg0, %c0_i32, %c0_i32_0 : i32, i32, i32
  }
}

</mosaic_0001>

<bundles_post_ra>
// kernel: tpu_custom_call.1
= control target key start
LH: loop header
LB: loop body
LE: loop exit
PB: predicated region body
PF: predicated region fallthrough
CT: control target
= control target key end

     0   :  { %9 = vsyncpa [#allocation3], 0  ;;  %s1338_s0 = inlined_call_operand.vmem [shape: f32[2,16,48], index: 0, kind: input, shape index: {}]   ;;  %s1339_s1 = inlined_call_operand.vmem [shape: f32[48,128], index: 1, kind: input, shape index: {}]   ;;  %s1340_s2 = inlined_call_operand.vmem [shape: f32[1,128], index: 2, kind: input, shape index: {}]   ;;  %s1341_s3 = inlined_call_operand.vmem [shape: f32[256,16], index: 3, kind: input, shape index: {}]   ;;  %s1342_s4 = inlined_call_operand.hbm [shape: f32[2,256,128], index: 4, kind: output, shape index: {}]  }
   0x1   :  { %11 = vsyncpa [#allocation3 + $0x1], 0  ;;  %s1048_s15 = smov 0   ;;  %s1050_s16 = smov 0  }
   0x2   :  { %s1052_s17 = smov 0   ;;  %s1054_s18 = smov 0  }
   0x3 LB: > { %s1069_s19 = sadd.s32 4294967295, %s1018_s18   ;;  %s755_s20 = sadd.s32 4294967294, %s1018_s18   ;;  %s1018_s18 = sphi %s1054_s18, %s1348_s18   ;;  %s1014_s17 = sphi %s1052_s17, %s1347_s17   ;;  %s1010_s16 = sphi %s1050_s16, %s1346_s16   ;;  %s1006_s15 = sphi %s1048_s15, %s1345_s15  }
   0x4   : > { %s1073_s21 = sadd.s32 1, %s1018_s18   ;;  %s113_s22 = sadd.s32 1, %s1014_s17 }
   0x5   : > { %s110_s23 = ssub.s32 %s1018_s18, %s1073_s21  ;;  %p123_p0 = scmp.ne.s32.totalorder %s1014_s17, %s1010_s16 }
   0x6   : > { %p111_p1 = scmp.eq.s32.totalorder %s110_s23, 0  ;;  %p124_p2 = scmp.eq.s32.totalorder %s1069_s19, 1 }
   0x7   : > { %p129_p3 = scmp.ne.s32.totalorder %s1010_s16, %s1006_s15  ;;  %p130_p4 = scmp.eq.s32.totalorder %s755_s20, 1 }
   0x8   : > { %s1084_s24 = scalar_select %p111_p1, %s1014_s17, %s113_s22  }
   0x9   : > { %p1086_p5 = por %p124_p2, %p123_p0  ;;  %p1090_p6 = por %p130_p4, %p129_p3 }
   0xa   : > { %p758_p7 = scmp.ge.s32.totalorder %s1018_s18, 1  ;;  %p165_p8 = scmp.lt.s32.totalorder %s1018_s18, 3 }
   0xc   : > { %p166_p9 = pnand %p758_p7, %p165_p8 }
   0xd   : > { %p191_p10 = scmp.lt.s32.totalorder (!%p166_p9), %s1069_s19, 1  ;;  %s188_s22 = sand.u32 (!%p166_p9), 1, %s1010_s16  }
   0xe   : > { %169 = sbr.rel (%p166_p9) target bundleno = 476 (0x1dc), region = 36  ;;  %s759_s23 = sshll.u32 (!%p166_p9), %s188_s22, 8 }
   0xf   : > { %s1253_s27 = scalar_lea.vmem (!%p166_p9), [#allocation2], %s759_s23  ;;  %s803_s28 = sshll.u32 (!%p166_p9), %s1069_s19, 12 }
  0x10   : > { %s693_s29 = sshll.u32 (!%p166_p9), %s1253_s27, 4  ;;  %s1290_s6 = scalar_lea.hbm (!%p166_p9), %s1342_s4, %s803_s28  ;;  %s1292_s29 = int_to_ptr.vmem [resolvable:$true] %s693_s29 }
  0x11   : > { %s1020_s8 = smov (!%p166_p9), [#allocation2]  }
  0x12   : > { %s962_s9 = sshll.u32 (!%p166_p9), %s1020_s8, 4  ;;  %s963_s9 = int_to_ptr.vmem [resolvable:$false] %s962_s9 }
  0x13   : > { %v203_v0 = vld [vmem:[%s1339_s1 + $0x28] sm:$0xff]  ;;  %v202_v1 = vld [vmem:[%s1339_s1 + $0x20] sm:$0xff]  ;;  %v201_v2 = vld [vmem:[%s1339_s1 + $0x18] sm:$0xff]  ;;  %s192_s7 = scalar_select %p191_p10, %s1069_s19, 1  ;;  %vm211_vm0 = vcmask 392192   ;;  %vm325_vm1 = vcmask 130048  }
  0x14   : > { %846 = vmatprep.subr.mxu0 %v203_v0  ;;  %v200_v3 = vld [vmem:[%s1339_s1 + $0x10] sm:$0xff]  ;;  %v199_v4 = vld [vmem:[%s1339_s1 + $0x8] sm:$0xff]  ;;  %v198_v6 = vld [vmem:[%s1339_s1] sm:$0xff]  ;;  %s958_s19 = scalar_lea.vmem %s1292_s29, 4096  ;;  %p965_p0 = scmp.lt.s32.totalorder %s1292_s29, %s963_s9 }
  0x15   : > { %847 = vmatpush3.msra.mxu0 %v203_v0  ;;  %s802_s10 = sshll.u32 %s192_s7, 4  ;;  %v305_v8 = vld [vmem:[%s1341_s3 + $0x60] sm:$0xff]  ;;  %v306_v15 = vld [vmem:[%s1341_s3 + $0x68] sm:$0xff]  ;;  %v307_v17 = vld [vmem:[%s1341_s3 + $0x70] sm:$0xff]  ;;  %s1298_s7 = scalar_lea.sflag [#allocation3], %s188_s22 }
  0x16   : > { %848 = vmatprep.subr.mxu0 %v202_v1  ;;  %s195_s13 = scalar_lea.vmem %s1338_s0, %s802_s10  ;;  %883 = vmatprep.mubr.msk.f32.mxu1 %vm325_vm1, %v305_v8  ;;  %v293_v9 = vld [vmem:[%s1341_s3] sm:$0xff]  ;;  %v294_v16 = vld [vmem:[%s1341_s3 + $0x8] sm:$0xff]  ;;  %v295_v18 = vld [vmem:[%s1341_s3 + $0x10] sm:$0xff]  ;;  %p959_p11 = scmp.ne.s32.totalorder %s1292_s29, %s958_s19 }
  0x17   : > { %849 = vmatpush3.msra.mxu0 %v202_v1  ;;  %v196_v5 = vld [vmem:[%s195_s13] sm:$0xff]  ;;  %v197_v7 = vld [vmem:[%s195_s13 + $0x8] sm:$0xff]  ;;  %v308_v19 = vld [vmem:[%s1341_s3 + $0x78] sm:$0xff]  ;;  %s964_s10 = scalar_lea.vmem %s963_s9, 8192 }
  0x18   : > { %850 = vmatprep.subr.mxu0 %v201_v2  ;;  %858 = vmatprep.mubr.msk.f32.mxu0 %vm211_vm0, %v196_v5  ;;  %v762_v10 = vld [vmem:[%s1340_s2] ss:$0 sm:$0xff]  ;;  %v296_v20 = vld [vmem:[%s1341_s3 + $0x18] sm:$0xff]  ;;  %v310_v23 = vld [vmem:[%s1341_s3 + $0x88] sm:$0xff]  ;;  %p960_p12 = pnand %p959_p11, %p1086_p5  ;;  %p966_p1 = scmp.lt.s32.totalorder %s964_s10, %s958_s19 }
  0x19   : > { %851 = vmatpush3.msra.mxu0 %v201_v2  ;;  %v309_v21 = vld [vmem:[%s1341_s3 + $0x80] sm:$0xff]  ;;  %v298_v24 = vld [vmem:[%s1341_s3 + $0x28] sm:$0xff]  ;;  %v311_v25 = vld [vmem:[%s1341_s3 + $0x90] sm:$0xff] }
  0x1a   : > { %852 = vmatprep.subr.mxu0 %v200_v3  ;;  %v297_v22 = vld [vmem:[%s1341_s3 + $0x20] sm:$0xff]  ;;  %v299_v26 = vld [vmem:[%s1341_s3 + $0x30] sm:$0xff]  ;;  %v312_v27 = vld [vmem:[%s1341_s3 + $0x98] sm:$0xff]  ;;  %p961_p13 = pneg %p960_p12  ;;  %p967_p2 = por %p966_p1, %p965_p0 }
  0x1b   : > { %853 = vmatpush3.msra.mxu0 %v200_v3  ;;  %v300_v28 = vld [vmem:[%s1341_s3 + $0x38] sm:$0xff]  ;;  %v313_v29 = vld [vmem:[%s1341_s3 + $0xa0] sm:$0xff]  ;;  %v314_v31 = vld [vmem:[%s1341_s3 + $0xa8] sm:$0xff] }
  0x1c   : > { %854 = vmatprep.subr.mxu0 %v199_v4  ;;  %v301_v30 = vld [vmem:[%s1341_s3 + $0x40] sm:$0xff]  ;;  %v302_v32 = vld [vmem:[%s1341_s3 + $0x48] sm:$0xff]  ;;  %v315_v33 = vld [vmem:[%s1341_s3 + $0xb0] sm:$0xff]  ;;  %p968_p3 = pnand %p967_p2, %p961_p13 }
  0x1d   : > { %855 = vmatpush3.msra.mxu0 %v199_v4  ;;  %v303_v34 = vld [vmem:[%s1341_s3 + $0x50] sm:$0xff]  ;;  %v316_v35 = vld [vmem:[%s1341_s3 + $0xb8] sm:$0xff]  ;;  %v317_v37 = vld [vmem:[%s1341_s3 + $0xc0] sm:$0xff] }
  0x1e   : > { %856 = vmatprep.subr.mxu0 %v198_v6  ;;  %v304_v36 = vld [vmem:[%s1341_s3 + $0x58] sm:$0xff]  ;;  %v318_v38 = vld [vmem:[%s1341_s3 + $0xc8] sm:$0xff]  ;;  %v319_v39 = vld [vmem:[%s1341_s3 + $0xd0] sm:$0xff] }
  0x1f   : > { %857 = vmatpush3.msra.mxu0 %v198_v6  ;;  %v320_v40 = vld [vmem:[%s1341_s3 + $0xd8] sm:$0xff]  ;;  %v321_v41 = vld [vmem:[%s1341_s3 + $0xe0] sm:$0xff]  ;;  %v322_v42 = vld [vmem:[%s1341_s3 + $0xe8] sm:$0xff] }
  0x20   : > { %859 = vmatmul.mubr.msk.f32.vlgmr.msra.gmra.mxu0 %vm211_vm0, %v197_v7  ;;  %v323_v43 = vld [vmem:[%s1341_s3 + $0xf0] sm:$0xff]  ;;  %v324_v44 = vld [vmem:[%s1341_s3 + $0xf8] sm:$0xff] }
  0x21   : > { %865 = vmatprep.mubr.msk.f32.mxu0 %vm325_vm1, %v293_v9 }
  0xe0   : > { %v860_v11 = vpop.f32.mrf.mxu0 }
  0xe1   : > { %v290_v12 = vadd.f32 %v860_v11, %v762_v10 }
  0xe2   : > { %v284_v13 = vpop.f32.mrf.mxu0 }
  0xe3   : > { %v285_v14 = vadd.f32 %v762_v10, %v284_v13  ;;  %861 = vmatprep.subr.mxu0 %v290_v12  ;;  %913 = vmatprep.subr.mxu1 %v290_v12 }
  0xe4   : > { %862 = vmatpush3.msra.mxu0 %v290_v12  ;;  %915 = vmatpush3.msra.mxu1 %v290_v12 }
  0xe5   : > { %863 = vmatprep.subr.mxu0 %v285_v14  ;;  %914 = vmatprep.subr.mxu1 %v285_v14 }
  0xe6   : > { %864 = vmatpush3.msra.mxu0 %v285_v14  ;;  %916 = vmatpush3.msra.mxu1 %v285_v14 }
  0xe7   : > { %884 = vmatmul.mubr.msk.f32.vlgmr.msra.gmra.mxu1 %vm325_vm1, %v306_v15  ;;  %866 = vmatmul.mubr.msk.f32.vlgmr.msra.gmra.mxu0 %vm325_vm1, %v294_v16 }
  0xe8   : > { %886 = vmatprep.mubr.msk.f32.mxu1 %vm325_vm1, %v307_v17  ;;  %868 = vmatprep.mubr.msk.f32.mxu0 %vm325_vm1, %v295_v18 }
  0xeb   : > { %887 = vmatmul.mubr.msk.f32.gmra.mxu1 %vm325_vm1, %v308_v19  ;;  %869 = vmatmul.mubr.msk.f32.gmra.mxu0 %vm325_vm1, %v296_v20 }
  0xec   : > { %889 = vmatprep.mubr.msk.f32.mxu1 %vm325_vm1, %v309_v21  ;;  %871 = vmatprep.mubr.msk.f32.mxu0 %vm325_vm1, %v297_v22 }
  0xef   : > { %890 = vmatmul.mubr.msk.f32.gmra.mxu1 %vm325_vm1, %v310_v23  ;;  %872 = vmatmul.mubr.msk.f32.gmra.mxu0 %vm325_vm1, %v298_v24 }
  0xf0   : > { %892 = vmatprep.mubr.msk.f32.mxu1 %vm325_vm1, %v311_v25  ;;  %874 = vmatprep.mubr.msk.f32.mxu0 %vm325_vm1, %v299_v26 }
  0xf3   : > { %893 = vmatmul.mubr.msk.f32.gmra.mxu1 %vm325_vm1, %v312_v27  ;;  %875 = vmatmul.mubr.msk.f32.gmra.mxu0 %vm325_vm1, %v300_v28 }
  0xf4   : > { %895 = vmatprep.mubr.msk.f32.mxu1 %vm325_vm1, %v313_v29  ;;  %877 = vmatprep.mubr.msk.f32.mxu0 %vm325_vm1, %v301_v30 }
  0xf7   : > { %896 = vmatmul.mubr.msk.f32.gmra.mxu1 %vm325_vm1, %v314_v31  ;;  %878 = vmatmul.mubr.msk.f32.gmra.mxu0 %vm325_vm1, %v302_v32 }
  0xf8   : > { %898 = vmatprep.mubr.msk.f32.mxu1 %vm325_vm1, %v315_v33  ;;  %880 = vmatprep.mubr.msk.f32.mxu0 %vm325_vm1, %v303_v34 }
  0xfb   : > { %899 = vmatmul.mubr.msk.f32.gmra.mxu1 %vm325_vm1, %v316_v35  ;;  %881 = vmatmul.mubr.msk.f32.gmra.mxu0 %vm325_vm1, %v304_v36 }
  0xfc   : > { %901 = vmatprep.mubr.msk.f32.mxu1 %vm325_vm1, %v317_v37 }
  0xff   : > { %902 = vmatmul.mubr.msk.f32.gmra.mxu1 %vm325_vm1, %v318_v38 }
 0x100   : > { %904 = vmatprep.mubr.msk.f32.mxu1 %vm325_vm1, %v319_v39 }
 0x103   : > { %905 = vmatmul.mubr.msk.f32.gmra.mxu1 %vm325_vm1, %v320_v40 }
 0x104   : > { %907 = vmatprep.mubr.msk.f32.mxu1 %vm325_vm1, %v321_v41 }
 0x107   : > { %908 = vmatmul.mubr.msk.f32.gmra.mxu1 %vm325_vm1, %v322_v42 }
 0x108   : > { %910 = vmatprep.mubr.msk.f32.mxu1 %vm325_vm1, %v323_v43 }
 0x10b   : > { %911 = vmatmul.mubr.msk.f32.gmra.mxu1 %vm325_vm1, %v324_v44 }
 0x1a7   : > { %v885_v45 = vpop.f32.mrf.mxu1  ;;  %v867_v46 = vpop.f32.mrf.mxu0 }
 0x1a8   : > { %660 = vst [vmem:[%s1253_s27 + $0x68] sm:$0xff] %v885_v45  ;;  %648 = vst [vmem:[%s1253_s27 + $0x8] sm:$0xff] %v867_v46 }
 0x1a9   : > { %v548_v47 = vpop.f32.mrf.mxu1  ;;  %v488_v48 = vpop.f32.mrf.mxu0 }
 0x1aa   : > { %659 = vst [vmem:[%s1253_s27 + $0x60] sm:$0xff] %v548_v47  ;;  %647 = vst [vmem:[%s1253_s27] sm:$0xff] %v488_v48 }
 0x1ab   : > { %v888_v49 = vpop.f32.mrf.mxu1  ;;  %v870_v50 = vpop.f32.mrf.mxu0 }
 0x1ac   : > { %662 = vst [vmem:[%s1253_s27 + $0x78] sm:$0xff] %v888_v49  ;;  %650 = vst [vmem:[%s1253_s27 + $0x18] sm:$0xff] %v870_v50 }
 0x1ad   : > { %v558_v51 = vpop.f32.mrf.mxu1  ;;  %v498_v52 = vpop.f32.mrf.mxu0 }
 0x1ae   : > { %661 = vst [vmem:[%s1253_s27 + $0x70] sm:$0xff] %v558_v51  ;;  %649 = vst [vmem:[%s1253_s27 + $0x10] sm:$0xff] %v498_v52 }
 0x1af   : > { %v891_v53 = vpop.f32.mrf.mxu1  ;;  %v873_v54 = vpop.f32.mrf.mxu0 }
 0x1b0   : > { %664 = vst [vmem:[%s1253_s27 + $0x88] sm:$0xff] %v891_v53  ;;  %652 = vst [vmem:[%s1253_s27 + $0x28] sm:$0xff] %v873_v54 }
 0x1b1   : > { %v568_v55 = vpop.f32.mrf.mxu1  ;;  %v508_v56 = vpop.f32.mrf.mxu0 }
 0x1b2   : > { %663 = vst [vmem:[%s1253_s27 + $0x80] sm:$0xff] %v568_v55  ;;  %651 = vst [vmem:[%s1253_s27 + $0x20] sm:$0xff] %v508_v56 }
 0x1b3   : > { %v894_v57 = vpop.f32.mrf.mxu1  ;;  %v876_v58 = vpop.f32.mrf.mxu0 }
 0x1b4   : > { %666 = vst [vmem:[%s1253_s27 + $0x98] sm:$0xff] %v894_v57  ;;  %654 = vst [vmem:[%s1253_s27 + $0x38] sm:$0xff] %v876_v58 }
 0x1b5   : > { %v578_v59 = vpop.f32.mrf.mxu1  ;;  %v518_v60 = vpop.f32.mrf.mxu0 }
 0x1b6   : > { %665 = vst [vmem:[%s1253_s27 + $0x90] sm:$0xff] %v578_v59  ;;  %653 = vst [vmem:[%s1253_s27 + $0x30] sm:$0xff] %v518_v60 }
 0x1b7   : > { %v897_v61 = vpop.f32.mrf.mxu1  ;;  %v879_v62 = vpop.f32.mrf.mxu0 }
 0x1b8   : > { %668 = vst [vmem:[%s1253_s27 + $0xa8] sm:$0xff] %v897_v61  ;;  %656 = vst [vmem:[%s1253_s27 + $0x48] sm:$0xff] %v879_v62 }
 0x1b9   : > { %v588_v63 = vpop.f32.mrf.mxu1  ;;  %v528_v0 = vpop.f32.mrf.mxu0 }
 0x1ba   : > { %667 = vst [vmem:[%s1253_s27 + $0xa0] sm:$0xff] %v588_v63  ;;  %655 = vst [vmem:[%s1253_s27 + $0x40] sm:$0xff] %v528_v0 }
 0x1bb   : > { %v900_v1 = vpop.f32.mrf.mxu1  ;;  %v882_v2 = vpop.f32.mrf.mxu0 }
 0x1bc   : > { %670 = vst [vmem:[%s1253_s27 + $0xb8] sm:$0xff] %v900_v1  ;;  %658 = vst [vmem:[%s1253_s27 + $0x58] sm:$0xff] %v882_v2 }
 0x1bd   : > { %v598_v3 = vpop.f32.mrf.mxu1  ;;  %v538_v4 = vpop.f32.mrf.mxu0 }
 0x1be   : > { %669 = vst [vmem:[%s1253_s27 + $0xb0] sm:$0xff] %v598_v3  ;;  %657 = vst [vmem:[%s1253_s27 + $0x50] sm:$0xff] %v538_v4 }
 0x1bf   : > { %v903_v5 = vpop.f32.mrf.mxu1 }
 0x1c0   : > { %672 = vst [vmem:[%s1253_s27 + $0xc8] sm:$0xff] %v903_v5 }
 0x1c1   : > { %v608_v6 = vpop.f32.mrf.mxu1 }
 0x1c2   : > { %671 = vst [vmem:[%s1253_s27 + $0xc0] sm:$0xff] %v608_v6 }
 0x1c3   : > { %v906_v7 = vpop.f32.mrf.mxu1 }
 0x1c4   : > { %674 = vst [vmem:[%s1253_s27 + $0xd8] sm:$0xff] %v906_v7 }
 0x1c5   : > { %v618_v8 = vpop.f32.mrf.mxu1 }
 0x1c6   : > { %673 = vst [vmem:[%s1253_s27 + $0xd0] sm:$0xff] %v618_v8 }
 0x1c7   : > { %v909_v9 = vpop.f32.mrf.mxu1 }
 0x1c8   : > { %676 = vst [vmem:[%s1253_s27 + $0xe8] sm:$0xff] %v909_v9 }
 0x1c9   : > { %v628_v10 = vpop.f32.mrf.mxu1 }
 0x1ca   : > { %675 = vst [vmem:[%s1253_s27 + $0xe0] sm:$0xff] %v628_v10 }
 0x1cb   : > { %v912_v11 = vpop.f32.mrf.mxu1 }
 0x1cc   : > { %678 = vst [vmem:[%s1253_s27 + $0xf8] sm:$0xff] %v912_v11 }
 0x1cd   : > { %v638_v12 = vpop.f32.mrf.mxu1 }
 0x1ce   : > { %677 = vst [vmem:[%s1253_s27 + $0xf0] sm:$0xff] %v638_v12 }
 0x1cf   : > { %971 = shalt.err (!%p968_p3)
}
 0x1d0   : > { %s972_s11 = scalar_lea.hbm %s1290_s6, 4096  ;;  %s976_s14 = scalar_lea.hbm %s1342_s4, 8192 }
 0x1d1   : > { %p973_p4 = scmp.ne.s32.totalorder %s1290_s6, %s972_s11  ;;  %p977_p9 = scmp.lt.s32.totalorder %s1290_s6, %s1342_s4 }
 0x1d2   : > { %p978_p10 = scmp.lt.s32.totalorder %s976_s14, %s972_s11 }
 0x1d3   : > { %p974_p7 = pnand %p973_p4, %p1086_p5 }
 0x1d4   : > { %p979_p11 = por %p978_p10, %p977_p9 }
 0x1d5   : > { %p975_p8 = pneg %p974_p7 }
 0x1d7   : > { %p980_p12 = pnand %p979_p11, %p975_p8 }
 0x1d9   : > { %983 = shalt.err (!%p980_p12)
}
 0x1da   : > { %s1021_s23 = smov 128   ;;  %s1022_s27 = smov 8  }
 0x1db   : > { %917 = dma.vmem_to_hbm [thread:$0]  (%p1086_p5), %s1292_s29, 4096, %s1290_s6, %s1298_s7, %s1021_s23, %s1021_s23, %s1022_s27  }
 0x1dc PF: > { %p923_p13 = scmp.ge.s32.totalorder %s1018_s18, 2  ;;  %s708_s28 = sand.u32 1, %s1006_s15  }
 0x1dd   : > { %s709_s30 = scalar_lea.sflag [#allocation3], %s708_s28 }
 0x1de   : > { %p920_p0 = pnand %p923_p13, %p1090_p6 }
 0x1e0   : > { %p921_p1 = pneg %p920_p0 }
 0x1e2   : > { %1001 = dma.done.wait (%p921_p1), %s709_s30, 4096  }
 0x1e3   : > { %1003 = vsyncadd (%p921_p1), %s709_s30, 4294963200  ;;  %p14_p2 = scmp.ge.s32.totalorder %s1073_s21, 4   ;;  %s1345_s15 = smov %s1010_s16 }
 0x1e4   : > { %s1346_s16 = smov %s1014_s17  ;;  %s1347_s17 = smov %s1084_s24 }
 0x1e5   : > { %s1348_s18 = smov %s1073_s21  ;;  %16 = sbr.rel (!%p14_p2) target bundleno = 3 (0x3), region = 71 }
 0x1ea   :  { %714 = vsyncpa [#allocation3], 1 }
 0x1eb   :  { %716 = vsyncpa [#allocation3 + $0x1], 1 }

</bundles_post_ra>
